<compile_context>
chip_gen: v7x
topology: tpu7x:2x2x1
jax: 0.10.0
libtpu: 0.0.40
codegen_flags: <defaults>
</compile_context>

<pallas_src>
import jax
import jax.numpy as jnp
from jax.experimental import pallas as pl
from jax.experimental.pallas import tpu as pltpu


def _round_up(x, m):
    return ((x + m - 1) // m) * m


def _sse_kernel(x_ref, w_ref, b_ref, o_ref):
    # x_ref, o_ref: (1, C, TS) VMEM tiles
    # w_ref: (C,) SMEM conv weight (1x1x1 conv == per-channel scalar)
    # b_ref: (1,)  SMEM conv bias
    c_dim = x_ref.shape[1]
    ts = x_ref.shape[2]

    # 1x1x1 Conv3d -> 1 output channel: scalar-weighted accumulate over C.
    # Keeps only the x tile + one (1, TS) f32 accumulator live (no (C, TS)
    # f32 temporary), so larger TS fits the 64-vreg budget without spills.
    logits = jnp.full((1, ts), b_ref[0], dtype=jnp.float32)
    for c in range(c_dim):  # static unroll; C is small
        logits = logits + w_ref[c] * x_ref[:, c, :].astype(jnp.float32)

    # Gate on EUP, cast once to the I/O dtype, then a single broadcast multiply.
    gate = jax.nn.sigmoid(logits).astype(o_ref.dtype)          # (1, TS)
    o_ref[...] = x_ref[...] * gate[:, None, :]                 # broadcast over C


def sse_forward(x, weight, bias, *, ts_target=2048):
    """x: (N, C, D, H, W), weight: (C,), bias: scalar -> (N, C, D, H, W)."""
    N, C, D, H, W = x.shape
    S = D * H * W

    # Lane-dense tile: multiple of 128, capped at ts_target; pad S so TS | S_pad
    # (zero padding -> finite gate, masked-off region sliced away below).
    ts = min(ts_target, _round_up(S, 128))
    s_pad = _round_up(S, ts)

    x_flat = x.reshape(N, C, S)
    if s_pad != S:
        x_flat = jnp.pad(x_flat, ((0, 0), (0, 0), (0, s_pad - S)))

    w = weight.reshape(C).astype(jnp.float32)
    b = jnp.reshape(bias.astype(jnp.float32), (1,))

    itemsize = jnp.dtype(x.dtype).itemsize
    cost = pl.CostEstimate(
        flops=2 * N * C * S,                  # multiply-accumulate over C
        transcendentals=N * S,                # one sigmoid per voxel
        bytes_accessed=2 * N * C * S * itemsize,  # read x + write out
    )

    out_flat = pl.pallas_call(
        _sse_kernel,
        out_shape=jax.ShapeDtypeStruct((N, C, s_pad), x.dtype),
        grid_spec=pltpu.PrefetchScalarGridSpec(
            num_scalar_prefetch=0,
            grid=(N, s_pad // ts),
            in_specs=[
                pl.BlockSpec((1, C, ts), lambda n, s: (n, 0, s)),
                pl.BlockSpec(memory_space=pltpu.MemorySpace.SMEM),
                pl.BlockSpec(memory_space=pltpu.MemorySpace.SMEM),
            ],
            out_specs=pl.BlockSpec((1, C, ts), lambda n, s: (n, 0, s)),
        ),
        compiler_params=pltpu.CompilerParams(
            dimension_semantics=("parallel", "parallel"),
        ),
        cost_estimate=cost,
    )(x_flat, w, b)

    if s_pad != S:
        out_flat = out_flat[:, :, :S]
    return out_flat.reshape(N, C, D, H, W)


def sse_reference(x, weight, bias):
    logits = jnp.einsum("ncdhw,c->ndhw", x, weight)[:, None] + bias
    gate = jax.nn.sigmoid(logits)
    return x * gate


if __name__ == "__main__":
    key = jax.random.PRNGKey(0)
    kx, kw, kb, kx2 = jax.random.split(key, 4)

    # Small shapes consistent with a Conv3d NCDHW forward.
    N, C, D, H, W = 2, 4, 4, 8, 8
    x = jax.random.normal(kx, (N, C, D, H, W), dtype=jnp.float32)

    # Deterministic Conv3d(C -> 1, k=1) init: weight (1,C,1,1,1) -> (C,), bias (1,)
    fan_in = C  # C * 1 * 1 * 1
    bound = 1.0 / (fan_in ** 0.5)
    weight = jax.random.uniform(kw, (C,), jnp.float32, -bound, bound)
    bias = jax.random.uniform(kb, (), jnp.float32, -bound, bound)

    out = sse_forward(x, weight, bias)
    out = jax.block_until_ready(out)
    ref = sse_reference(x, weight, bias)
    assert out.shape == (N, C, D, H, W)
    assert jnp.allclose(out, ref, atol=1e-5, rtol=1e-5), "mismatch vs reference"

    # Second case exercising the padded / ragged-S path (S = 3*5*7 = 105).
    x2 = jax.random.normal(kx2, (1, C, 3, 5, 7), dtype=jnp.float32)
    out2 = jax.block_until_ready(sse_forward(x2, weight, bias))
    ref2 = sse_reference(x2, weight, bias)
    assert jnp.allclose(out2, ref2, atol=1e-5, rtol=1e-5), "mismatch vs reference (padded)"

    print("KERNEL_OK")
</pallas_src>

<mosaic_0001>
module attributes {stable_mosaic.version = 11 : i64} {
  func.func @_sse_kernel(%arg0: i32, %arg1: i32, %arg2: memref<1x4x256xf32, #tpu.memory_space<vmem>>, %arg3: memref<4xf32, #tpu.memory_space<smem>>, %arg4: memref<1xf32, #tpu.memory_space<smem>>, %arg5: memref<1x4x256xf32, #tpu.memory_space<vmem>>) attributes {dimension_semantics = [#tpu.dimension_semantics<parallel>, #tpu.dimension_semantics<parallel>], iteration_bounds = array<i64: 2, 1>, scalar_prefetch = 0 : i64, scratch_operands = 0 : i64, tpu.core_type = #tpu.core_type<tc>, window_params = [{transform_indices = @transform_0, window_bounds = array<i64: 1, 4, 256>}, {transform_indices = @transform_1, window_bounds = array<i64: 4>}, {transform_indices = @transform_2, window_bounds = array<i64: 1>}, {transform_indices = @transform_3, window_bounds = array<i64: 1, 4, 256>}]} {
    %c0 = arith.constant 0 : index
    %0 = memref.load %arg4[%c0] : memref<1xf32, #tpu.memory_space<smem>>
    %1 = vector.broadcast %0 : f32 to vector<1x256xf32>
    %c0_0 = arith.constant 0 : index
    %2 = memref.load %arg3[%c0_0] : memref<4xf32, #tpu.memory_space<smem>>
    %c0_1 = arith.constant 0 : index
    %c0_2 = arith.constant 0 : index
    %c0_3 = arith.constant 0 : index
    %3 = vector.load %arg2[%c0_1, %c0_2, %c0_3] : memref<1x4x256xf32, #tpu.memory_space<vmem>>, vector<1x1x256xf32>
    %4 = vector.shape_cast %3 : vector<1x1x256xf32> to vector<1x256xf32>
    %5 = vector.broadcast %2 : f32 to vector<1x256xf32>
    %6 = arith.mulf %5, %4 : vector<1x256xf32>
    %7 = arith.addf %1, %6 : vector<1x256xf32>
    %c1 = arith.constant 1 : index
    %8 = memref.load %arg3[%c1] : memref<4xf32, #tpu.memory_space<smem>>
    %c0_4 = arith.constant 0 : index
    %c1_5 = arith.constant 1 : index
    %c0_6 = arith.constant 0 : index
    %9 = vector.load %arg2[%c0_4, %c1_5, %c0_6] : memref<1x4x256xf32, #tpu.memory_space<vmem>>, vector<1x1x256xf32>
    %10 = vector.shape_cast %9 : vector<1x1x256xf32> to vector<1x256xf32>
    %11 = vector.broadcast %8 : f32 to vector<1x256xf32>
    %12 = arith.mulf %11, %10 : vector<1x256xf32>
    %13 = arith.addf %7, %12 : vector<1x256xf32>
    %c2 = arith.constant 2 : index
    %14 = memref.load %arg3[%c2] : memref<4xf32, #tpu.memory_space<smem>>
    %c0_7 = arith.constant 0 : index
    %c2_8 = arith.constant 2 : index
    %c0_9 = arith.constant 0 : index
    %15 = vector.load %arg2[%c0_7, %c2_8, %c0_9] : memref<1x4x256xf32, #tpu.memory_space<vmem>>, vector<1x1x256xf32>
    %16 = vector.shape_cast %15 : vector<1x1x256xf32> to vector<1x256xf32>
    %17 = vector.broadcast %14 : f32 to vector<1x256xf32>
    %18 = arith.mulf %17, %16 : vector<1x256xf32>
    %19 = arith.addf %13, %18 : vector<1x256xf32>
    %c3 = arith.constant 3 : index
    %20 = memref.load %arg3[%c3] : memref<4xf32, #tpu.memory_space<smem>>
    %c0_10 = arith.constant 0 : index
    %c3_11 = arith.constant 3 : index
    %c0_12 = arith.constant 0 : index
    %21 = vector.load %arg2[%c0_10, %c3_11, %c0_12] : memref<1x4x256xf32, #tpu.memory_space<vmem>>, vector<1x1x256xf32>
    %22 = vector.shape_cast %21 : vector<1x1x256xf32> to vector<1x256xf32>
    %23 = vector.broadcast %20 : f32 to vector<1x256xf32>
    %24 = arith.mulf %23, %22 : vector<1x256xf32>
    %25 = arith.addf %19, %24 : vector<1x256xf32>
    %26 = arith.negf %25 : vector<1x256xf32>
    %27 = math.exp %26 : vector<1x256xf32>
    %cst = arith.constant 1.000000e+00 : f32
    %28 = vector.broadcast %cst : f32 to vector<1x256xf32>
    %29 = arith.addf %28, %27 : vector<1x256xf32>
    %30 = arith.divf %28, %29 : vector<1x256xf32>
    %c0_13 = arith.constant 0 : index
    %c0_14 = arith.constant 0 : index
    %c0_15 = arith.constant 0 : index
    %31 = vector.load %arg2[%c0_13, %c0_14, %c0_15] : memref<1x4x256xf32, #tpu.memory_space<vmem>>, vector<1x4x256xf32>
    %32 = vector.shape_cast %30 : vector<1x256xf32> to vector<1x1x256xf32>
    %33 = vector.broadcast %32 : vector<1x1x256xf32> to vector<1x4x256xf32>
    %34 = arith.mulf %31, %33 : vector<1x4x256xf32>
    %c0_16 = arith.constant 0 : index
    %c0_17 = arith.constant 0 : index
    %c0_18 = arith.constant 0 : index
    %35 = vector.load %arg5[%c0_16, %c0_17, %c0_18] : memref<1x4x256xf32, #tpu.memory_space<vmem>>, vector<1x4x256xf32>
    tpu.vector_store %arg5[%c0_16, %c0_17, %c0_18], %34 {strides = array<i32>} : memref<1x4x256xf32, #tpu.memory_space<vmem>>, vector<1x4x256xf32>,
    return
  }
  func.func @transform_0(%arg0: i32, %arg1: i32) -> (i32, i32, i32) {
    %c0_i32 = arith.constant 0 : i32
    %c0_i32_0 = arith.constant 0 : i32
    return %arg0, %c0_i32, %arg1 : i32, i32, i32
  }
  func.func @transform_1(%arg0: i32, %arg1: i32) -> i32 {
    %c0_i32 = arith.constant 0 : i32
    %c0_i32_0 = arith.constant 0 : i32
    return %c0_i32 : i32
  }
  func.func @transform_2(%arg0: i32, %arg1: i32) -> i32 {
    %c0_i32 = arith.constant 0 : i32
    %c0_i32_0 = arith.constant 0 : i32
    return %c0_i32 : i32
  }
  func.func @transform_3(%arg0: i32, %arg1: i32) -> (i32, i32, i32) {
    %c0_i32 = arith.constant 0 : i32
    %c0_i32_0 = arith.constant 0 : i32
    return %arg0, %c0_i32, %arg1 : i32, i32, i32
  }
}

</mosaic_0001>

<bundles_post_ra>
// kernel: tpu_custom_call.1
= control target key start
LH: loop header
LB: loop body
LE: loop exit
PB: predicated region body
PF: predicated region fallthrough
CT: control target
= control target key end

     0   :  { %s852_s0 = inlined_call_operand.hbm [shape: f32[2,4,256], index: 0, kind: input, shape index: {}]   ;;  %s853_s1 = inlined_call_operand.vmem [shape: f32[4], index: 1, kind: input, shape index: {}]   ;;  %s854_s2 = inlined_call_operand.<no memory space> [shape: f32[1], index: 2, kind: input, shape index: {}]   ;;  %s855_s3 = inlined_call_operand.hbm [shape: f32[2,4,256], index: 3, kind: output, shape index: {}]  }
   0x1   :  { %8 = sst [smem:[#allocation2]] %s854_s2 }
   0x2   :  { %9 = vsyncpa [#allocation4], 0 }
   0x3   :  { %11 = vsyncpa [#allocation4 + $0x1], 0 }
   0x4   :  { %12 = vsyncpa [#allocation6], 0 }
   0x5   :  { %13 = vsyncpa [#allocation5], 0 }
   0x6   :  { %15 = vsyncpa [#allocation5 + $0x1], 0  ;;  %s642_s14 = smov 0   ;;  %s644_s15 = smov 0  }
   0x7   :  { %s646_s16 = smov 0   ;;  %s648_s17 = smov 0  }
   0x8   :  { %s650_s18 = smov 0   ;;  %s652_s19 = smov 0  }
   0x9 LB: > { %s380_s2 = sadd.s32 4294967295, %s614_s19   ;;  %s381_s20 = sadd.s32 4294967294, %s614_s19   ;;  %s614_s19 = sphi %s652_s19, %s21_s19   ;;  %s610_s18 = sphi %s650_s18, %s877_s18   ;;  %s606_s17 = sphi %s648_s17, %s876_s17   ;;  %s602_s16 = sphi %s646_s16, %s875_s16   ;;  %s598_s15 = sphi %s644_s15, %s874_s15   ;;  %s594_s14 = sphi %s642_s14, %s873_s14  }
   0xa   : > { %p55_p0 = scmp.ne.s32.totalorder %s598_s15, %s594_s14  ;;  %p676_p1 = scmp.eq.s32.totalorder %s380_s2, 0 }
   0xb   : > { %p680_p2 = scmp.eq.s32.totalorder %s380_s2, 1  ;;  %p129_p3 = scmp.eq.s32.totalorder %s381_s20, 1 }
   0xc   : > { %s860_s21 = scalar_select %p676_p1, 1, 0 }
   0xd   : > { %p686_p4 = por %p676_p1, %p55_p0  ;;  %p382_p5 = scmp.ge.s32.totalorder %s614_s19, 1 }
   0xe   : > { %p691_p6 = por %p129_p3, %p55_p0  ;;  %p136_p7 = scmp.lt.s32.totalorder %s614_s19, 3 }
   0xf   : > { %s862_s23 = scalar_select %p686_p4, 1, 0 }
  0x10   : > { %s863_s24 = scalar_select %p691_p6, 1, 0 }
  0x11   : > { %s149_s27 = sshll.u32 %s853_s1, 4  ;;  %p699_p8 = pnand %p382_p5, %p136_p7  ;;  %s150_s27 = int_to_ptr.vmem [resolvable:$true] %s149_s27 }
  0x12   : > { %s33_s30 = sadd.s32 1, %s610_s18  ;;  %s42_s4 = sadd.s32 1, %s602_s16 }
  0x13   : > { %p414_p10 = pneg %p699_p8  ;;  %p35_p12 = scmp.ge.s32.totalorder %s33_s30, 2 }
  0x14   : > { %s483_s5 = scalar_lea.vmem %s150_s27, 16  ;;  %p491_p7 = scmp.lt.s32.totalorder %s150_s27, %s150_s27 }
  0x15   : > { %p708_p11 = pnand %p414_p10, %p676_p1  ;;  %p484_p13 = scmp.ne.s32.totalorder %s150_s27, %s483_s5 }
  0x16   : > { %p492_p6 = scmp.lt.s32.totalorder %s483_s5, %s483_s5 }
  0x17   : > { %p485_p0 = pneg %p708_p11 }
  0x18   : > { %p493_p9 = por %p492_p6, %p491_p7 }
  0x19   : > { %p486_p3 = pnand %p485_p0, %p484_p13 }
  0x1b   : > { %p487_p5 = pneg %p486_p3 }
  0x1d   : > { %p494_p4 = pnand %p493_p9, %p487_p5 }
  0x1f   : > { %497 = shalt.err (!%p494_p4)
}
  0x20   : > { %s616_s6 = smov [#allocation7]   ;;  %s879_s30 = smov (%p35_p12, %s33_s30), 0 }
  0x21   : > { %417 = dma.vmem_to_smem (!%p708_p11), %s150_s27, 16, %s616_s6, [#allocation6]  }
  0x22   : > { %p49_p10 = scmp.ne.s32.totalorder %s602_s16, %s598_s15  ;;  %p50_p6 = scmp.eq.s32.totalorder %s614_s19, 0 }
  0x23   : > { %s37_s7 = ssub.s32 %s610_s18, %s879_s30  ;;  %p427_p4 = scmp.lt.s32.totalorder %s614_s19, 2 }
  0x24   : > { %p40_p9 = scmp.eq.s32.totalorder %s37_s7, 0  ;;  %p51_p13 = por %p50_p6, %p49_p10 }
  0x25   : > { %p728_p0 = por %p680_p2, %p49_p10  ;;  %s163_s9 = sand.u32 1, %s602_s16  }
  0x26   : > { %s734_s10 = scalar_select %p40_p9, %s602_s16, %s42_s4  }
  0x27   : > { %s866_s8 = scalar_select %p728_p0, 1, 0 }
  0x28   : > { %s385_s11 = sshll.u32 %s163_s9, 3  ;;  %s404_s12 = sshll.u32 %s610_s18, 7 }
  0x29   : > { %s740_s20 = scalar_lea.hbm %s852_s0, %s404_s12  ;;  %s167_s25 = scalar_lea.vmem [#allocation3], %s385_s11 }
  0x2a   : > { %s177_s22 = sshll.u32 %s167_s25, 4  ;;  %p744_p2 = pnand %p427_p4, %p51_p13  ;;  %s742_s22 = int_to_ptr.vmem [resolvable:$true] %s177_s22 }
  0x2b   : > { %s164_s27 = scalar_lea.sflag [#allocation4], %s163_s9  ;;  %s498_s29 = scalar_lea.hbm %s740_s20, 128 }
  0x2c   : > { %p499_p11 = scmp.ne.s32.totalorder %s740_s20, %s498_s29  ;;  %p500_p12 = pneg %p744_p2 }
  0x2d   : > { %s503_s6 = scalar_lea.hbm %s852_s0, 256  ;;  %p504_p7 = scmp.lt.u32.totalorder %s740_s20, %s852_s0 }
  0x2e   : > { %p501_p3 = pnand %p500_p12, %p499_p11  ;;  %p505_p10 = scmp.lt.u32.totalorder %s503_s6, %s498_s29 }
  0x2f   : > { %p507_p4 = scmp.lt.u32.totalorder %s498_s29, %s740_s20 }
  0x30   : > { %p502_p5 = pneg %p501_p3  ;;  %p506_p6 = por %p505_p10, %p504_p7 }
  0x32   : > { %p508_p9 = por %p507_p4, %p506_p6 }
  0x34   : > { %p509_p13 = pnand %p508_p9, %p502_p5 }
  0x36   : > { %512 = shalt.err (!%p509_p13)
}
  0x37   : > { %s513_s9 = scalar_lea.vmem %s742_s22, 128  ;;  %s617_s12 = smov [#allocation3]  }
  0x38   : > { %p514_p11 = scmp.ne.s32.totalorder %s742_s22, %s513_s9  ;;  %s518_s13 = sshll.u32 %s617_s12, 4  ;;  %s519_s13 = int_to_ptr.vmem [resolvable:$false] %s518_s13 }
  0x39   : > { %s520_s2 = scalar_lea.vmem %s519_s13, 256  ;;  %p521_p1 = scmp.lt.s32.totalorder %s742_s22, %s519_s13 }
  0x3a   : > { %p516_p3 = pnand %p514_p11, %p500_p12  ;;  %p522_p7 = scmp.lt.s32.totalorder %s520_s2, %s513_s9 }
  0x3c   : > { %p517_p0 = pneg %p516_p3  ;;  %p523_p10 = por %p522_p7, %p521_p1 }
  0x3e   : > { %p524_p6 = pnand %p523_p10, %p517_p0 }
  0x40   : > { %527 = shalt.err (!%p524_p6)
}
  0x41   : > { %421 = dma.hbm_to_vmem [thread:$0]  (!%p744_p2), %s740_s20, 128, %s742_s22, %s164_s27  }
  0x42   : > { %186 = sbr.rel (%p699_p8) target bundleno = 143 (0x8f), region = 32  ;;  %s776_s25 = sand.u32 (!%p699_p8), 1, %s598_s15  }
  0x43   : > { %s389_s29 = sshll.u32 (!%p699_p8), %s776_s25, 3  ;;  %s189_s4 = scalar_lea.sflag (!%p699_p8), [#allocation4], %s776_s25 }
  0x44   : > { %s782_s5 = scalar_lea.vmem (!%p699_p8), [#allocation3], %s389_s29  ;;  %p868_p1 = scmp.ne.s32.totalorder (!%p699_p8), %s862_s23, 0 }
  0x49   : > { %581 = dma.done.wait (%p868_p1), %s189_s4, 128  }
  0x4a   : > { %583 = vsyncadd (%p868_p1), %s189_s4, 4294967168  ;;  %p869_p0 = scmp.ne.s32.totalorder %s860_s21, 0 }
  0x4c   : > { %585 = dma.done.wait (%p869_p0), [#allocation6], 16  }
  0x4d   : > { %587 = vsyncadd (%p869_p0), [#allocation6], 4294967280 }
  0x4e   : > { %201 = sfence }
  0x4f   : > { %s222_s28 = sld [smem:[#allocation2]]  ;;  %s392_s22 = sld [smem:[#allocation7 + $0x1]]  ;;  %v225_v0 = vld [vmem:[%s782_s5] ss:$4 sm:$0x3]  ;;  %v255_v20 = vlaneseq }
  0x50   : > { %s224_s20 = sld [smem:[#allocation7]]  ;;  %s394_s26 = sld [smem:[#allocation7 + $0x2]]  ;;  %v393_v1 = vld [vmem:[%s782_s5 + $0x1] ss:$4 sm:$0x3] }
  0x51   : > { %s396_s27 = sld [smem:[#allocation7 + $0x3]]  ;;  %v395_v5 = vld [vmem:[%s782_s5 + $0x2] ss:$4 sm:$0x3]  ;;  %v256_v21 = vshrl.u32 %v255_v20, 7  ;;  %s219_s21 = scalar_lea.vmem [#allocation8], %s389_s29 }
  0x52   : > { %v397_v9 = vld [vmem:[%s782_s5 + $0x3] ss:$4 sm:$0x3]  ;;  %s284_s23 = sshll.u32 %s219_s21, 4  ;;  %s405_s6 = sshll.u32 %s606_s17, 7  ;;  %s800_s23 = int_to_ptr.vmem [resolvable:$true] %s284_s23 }
  0x53   : > { %v257_v22 = vsub.s32 0, %v256_v21  ;;  %v261_v23 = vsub.s32 1, %v256_v21  ;;  %v253_v27 = vld [vmem:[%s782_s5] sm:$0xff]  ;;  %s805_s9 = scalar_lea.hbm %s855_s3, %s405_s6  ;;  %s268_s12 = scalar_lea.sflag [#allocation5], %s776_s25 }
  0x54   : > { %s528_s13 = scalar_lea.vmem %s800_s23, 128  ;;  %p870_p2 = scmp.ne.s32.totalorder %s866_s8, 0 }
  0x55   : > { %v223_v2 = vstv %s222_s28  ;;  %v232_v4 = vstv %s392_s22  ;;  %p529_p8 = scmp.ne.s32.totalorder %s800_s23, %s528_s13  ;;  %s618_s17 = smov [#allocation8]  }
  0x56   : > { %v226_v3 = vstv %s224_s20  ;;  %v233_v7 = vmul.f32 %v393_v1, %v232_v4  ;;  %v238_v8 = vstv %s394_s26  ;;  %s532_s2 = sshll.u32 %s618_s17, 4  ;;  %s533_s2 = int_to_ptr.vmem [resolvable:$false] %s532_s2 }
  0x57   : > { %v227_v6 = vmul.f32 %v226_v3, %v225_v0  ;;  %v244_v10 = vstv %s396_s27  ;;  %v239_v12 = vmul.f32 %v395_v5, %v238_v8  ;;  %p530_p12 = pnand %p529_p8, %p870_p2  ;;  %s534_s29 = scalar_lea.vmem %s533_s2, 256 }
  0x58   : > { %v245_v14 = vmul.f32 %v397_v9, %v244_v10  ;;  %p535_p4 = scmp.lt.s32.totalorder %s800_s23, %s533_s2  ;;  %p536_p9 = scmp.lt.s32.totalorder %s534_s29, %s528_s13 }
  0x59   : > { %v228_v11 = vadd.f32 %v227_v6, %v223_v2  ;;  %p531_p5 = pneg %p530_p12 }
  0x5a   : > { %p537_p13 = por %p536_p9, %p535_p4 }
  0x5b   : > { %v234_v13 = vadd.f32 %v233_v7, %v228_v11 }
  0x5c   : > { %p538_p11 = pnand %p537_p13, %p531_p5 }
  0x5d   : > { %v240_v15 = vadd.f32 %v239_v12, %v234_v13 }
  0x5f   : > { %v246_v16 = vadd.f32 %v245_v14, %v240_v15 }
  0x61   : > { %v398_v17 = vmul.f32 -1.442695, %v246_v16 }
  0x63   : > { %479 = vpow2.f32 %v398_v17 }
  0x6d   : > { %v480_v18 = vpop.eup %479 }
  0x6e   : > { %v250_v19 = vadd.f32 1.0, %v480_v18 }
  0x70   : > { %481 = vrcp.f32 %v250_v19 }
  0x7a   : > { %v482_v24 = vpop.eup %481 }
  0x7b   : > { %v258_v25 = vrot.slane %v482_v24, %v257_v22  ;;  %v262_v26 = vrot.slane %v482_v24, %v261_v23 }
  0x7d   : > { %v263_v28 = vcombine.low %v258_v25, %v262_v26 }
  0x7f   : > { %v265_v29 = vmul.f32 %v263_v28, %v253_v27 }
  0x81   : > { %266 = vst [vmem:[%s219_s21] sm:$0xff] %v265_v29 }
  0x82   : > { %541 = shalt.err (!%p538_p11)
}
  0x83   : > { %s542_s25 = scalar_lea.hbm %s805_s9, 128  ;;  %s546_s28 = scalar_lea.hbm %s855_s3, 256 }
  0x84   : > { %p543_p3 = scmp.ne.s32.totalorder %s805_s9, %s542_s25  ;;  %p547_p6 = scmp.lt.u32.totalorder %s805_s9, %s855_s3 }
  0x85   : > { %p548_p1 = scmp.lt.u32.totalorder %s546_s28, %s542_s25  ;;  %p550_p8 = scmp.lt.u32.totalorder %s542_s25, %s805_s9 }
  0x86   : > { %p544_p7 = pnand %p543_p3, %p870_p2 }
  0x87   : > { %p549_p0 = por %p548_p1, %p547_p6 }
  0x88   : > { %p545_p10 = pneg %p544_p7 }
  0x89   : > { %p551_p12 = por %p550_p8, %p549_p0 }
  0x8b   : > { %p552_p5 = pnand %p551_p12, %p545_p10 }
  0x8d   : > { %555 = shalt.err (!%p552_p5)
}
  0x8e   : > { %412 = dma.vmem_to_hbm [thread:$0]  (%p870_p2), %s800_s23, 128, %s805_s9, %s268_s12  }
  0x8f PF: > { %s296_s26 = sand.u32 1, %s594_s14   ;;  %p871_p4 = scmp.ne.s32.totalorder %s863_s24, 0 }
  0x90   : > { %p872_p9 = scmp.ge.s32.totalorder %s614_s19, 2  ;;  %s297_s27 = scalar_lea.sflag [#allocation5], %s296_s26 }
  0x92   : > { %p423_p13 = pnand %p872_p9, %p871_p4 }
  0x94   : > { %589 = dma.done.wait (!%p423_p13), %s297_s27, 128  }
  0x95   : > { %591 = vsyncadd (!%p423_p13), %s297_s27, 4294967168  ;;  %s21_s19 = sadd.s32 1, %s614_s19   ;;  %s873_s14 = smov %s598_s15 }
  0x96   : > { %p18_p11 = scmp.ge.s32.totalorder %s21_s19, 4   ;;  %s874_s15 = smov %s602_s16 }
  0x97   : > { %s875_s16 = smov %s734_s10  ;;  %s876_s17 = smov %s610_s18 }
  0x98   : > { %s877_s18 = smov %s879_s30  ;;  %20 = sbr.rel (!%p18_p11) target bundleno = 9 (0x9), region = 85 }
  0x9f   :  { %302 = vsyncpa [#allocation4], 1 }
  0xa0   :  { %304 = vsyncpa [#allocation4 + $0x1], 1 }
  0xa1   :  { %305 = vsyncpa [#allocation5], 1 }
  0xa2   :  { %307 = vsyncpa [#allocation5 + $0x1], 1 }
  0xa3   :  { %308 = vsyncpa [#allocation6], 1 }
  0xa4   :  { %310 = vsyncpa [#allocation6 + $0x1], 1 }

</bundles_post_ra>
